<compile_context>
chip_gen: v5e
topology: v5e:2x2
jax: 0.10.0
libtpu: 0.0.40
codegen_flags: <defaults>
</compile_context>

<pallas_src>
import functools
import math

import jax
import jax.numpy as jnp
from jax.experimental import pallas as pl
from jax.experimental.pallas import tpu as pltpu


def make_positional_encoding_table(d_model, max_len):
    """Same construction as the PyTorch __init__ (constant (max_len, 1, D) buffer)."""
    position = jnp.arange(max_len, dtype=jnp.float32)[:, None]            # (L, 1)
    div_term = jnp.exp(
        jnp.arange(0, d_model, 2, dtype=jnp.float32)
        * (-math.log(10000.0) / d_model)
    )                                                                     # (D/2,)
    pe = jnp.zeros((max_len, 1, d_model), dtype=jnp.float32)
    pe = pe.at[:, 0, 0::2].set(jnp.sin(position * div_term))
    pe = pe.at[:, 0, 1::2].set(jnp.cos(position * div_term))
    return pe


def _pe_add_kernel(x_ref, pe_ref, o_ref, *, batch):
    """y = x + pe (pe broadcast over batch via lane-axis concatenation)."""
    x = x_ref[...].astype(jnp.float32)               # (tile_s, B*D)
    pe = pe_ref[...].astype(jnp.float32)             # (tile_s, D)
    if batch > 1:
        pe = jnp.concatenate([pe] * batch, axis=-1)  # (tile_s, B*D)
    o_ref[...] = (x + pe).astype(o_ref.dtype)


def _pe_add_dropout_kernel(x_ref, pe_ref, bits_ref, o_ref, *, batch, p):
    """y = dropout(x + pe, p) with an integer-threshold keep mask."""
    x = x_ref[...].astype(jnp.float32)               # (tile_s, B*D)
    pe = pe_ref[...].astype(jnp.float32)             # (tile_s, D)
    if batch > 1:
        pe = jnp.concatenate([pe] * batch, axis=-1)  # (tile_s, B*D)
    y = x + pe

    # keep iff bits >= round(p * 2**32)  ->  P(keep) = 1 - p (no float convert).
    thresh = jnp.uint32(min(int(round(p * 4294967296.0)), 4294967295))
    keep = bits_ref[...] >= thresh
    scale = jnp.float32(1.0 / (1.0 - p))
    o_ref[...] = jnp.where(keep, y * scale, 0.0).astype(o_ref.dtype)


def _pick_tile_s(S, row_bytes, target_tile_bytes):
    """Largest multiple-of-8 divisor of S with block bytes <= target."""
    if S % 8 != 0:
        return S
    target_rows = max(8, int(target_tile_bytes) // max(int(row_bytes), 1))
    limit = min(S, target_rows)
    best = None
    cand = 8
    while cand <= limit:
        if S % cand == 0:
            best = cand
        cand += 8
    return best if best is not None else S


def positional_encoding_forward(x, pe, *, p=0.1, training=False, seed=0,
                                tile_s=None, target_tile_bytes=1 << 20):
    """Positional encoding + dropout via a Pallas TPU kernel.

    x  : (S, B, D) array.
    pe : (max_len, 1, D) positional-encoding buffer (full buffer; the BlockSpec
         index_map does the [:S] slicing).
    """
    S, B, D = x.shape
    max_len = pe.shape[0]
    assert S <= max_len, "sequence longer than max_len of the pe buffer"
    BD = B * D

    # Free, contiguous reshapes to lane-dense 2D views.
    x2 = x.reshape(S, BD)
    pe2 = pe.reshape(max_len, D)

    row_bytes = BD * x.dtype.itemsize
    if tile_s is None:
        tile_s = _pick_tile_s(S, row_bytes, target_tile_bytes)
    tile_s = int(min(int(tile_s), S))
    if not (tile_s == S or (S % tile_s == 0 and tile_s % 8 == 0)):
        tile_s = S
    if tile_s == S and S % 8 != 0:
        # pe block second-to-last dim must be a multiple of 8 or the full dim.
        pe2 = pe2[:S]

    grid = (S // tile_s,)

    x_spec = pl.BlockSpec((tile_s, BD), lambda i: (i, 0))
    pe_spec = pl.BlockSpec((tile_s, D), lambda i: (i, 0))
    out_spec = pl.BlockSpec((tile_s, BD), lambda i: (i, 0))
    out_shape = jax.ShapeDtypeStruct((S, BD), x.dtype)
    cparams = pltpu.CompilerParams(dimension_semantics=("parallel",))

    p = float(p)
    if training and 0.0 < p < 1.0:
        # Portable dropout mask bits (uint32), laid out exactly like the
        # lane-dense output block so no padded PRNG work is done in-kernel.
        bits = jax.random.bits(jax.random.PRNGKey(seed), (S, BD),
                               dtype=jnp.uint32)
        kernel = functools.partial(_pe_add_dropout_kernel, batch=B, p=p)
        out2 = pl.pallas_call(
            kernel,
            out_shape=out_shape,
            grid=grid,
            in_specs=[x_spec, pe_spec,
                      pl.BlockSpec((tile_s, BD), lambda i: (i, 0))],
            out_specs=out_spec,
            compiler_params=cparams,
        )(x2, pe2, bits)
    elif training and p >= 1.0:
        out2 = jnp.zeros((S, BD), dtype=x.dtype)
    else:
        kernel = functools.partial(_pe_add_kernel, batch=B)
        out2 = pl.pallas_call(
            kernel,
            out_shape=out_shape,
            grid=grid,
            in_specs=[x_spec, pe_spec],
            out_specs=out_spec,
            compiler_params=cparams,
        )(x2, pe2)

    return out2.reshape(S, B, D)


if __name__ == "__main__":
    # Small shapes consistent with the module forward: (seq_len, batch, d_model)
    seq_len, batch, d_model = 8, 2, 32
    max_len = 64
    dropout_p = 0.1

    key = jax.random.PRNGKey(0)
    x = jax.random.normal(key, (seq_len, batch, d_model), dtype=jnp.float32)
    pe = make_positional_encoding_table(d_model, max_len)

    # Eval mode: dropout is identity -> deterministic check vs. reference.
    y_eval = jax.block_until_ready(
        positional_encoding_forward(x, pe, p=dropout_p, training=False))
    y_ref = x + pe[:seq_len]
    assert y_eval.shape == x.shape and y_eval.dtype == x.dtype
    assert jnp.allclose(y_eval, y_ref, atol=1e-6, rtol=1e-6)

    # Training mode: every element must be either 0 or (x + pe) / (1 - p).
    y_train = jax.block_until_ready(
        positional_encoding_forward(x, pe, p=dropout_p, training=True,
                                    seed=1234))
    assert y_train.shape == x.shape and y_train.dtype == x.dtype
    scaled = y_ref / (1.0 - dropout_p)
    ok = (jnp.isclose(y_train, 0.0, atol=1e-6)
          | jnp.isclose(y_train, scaled, atol=1e-5, rtol=1e-5))
    assert bool(jnp.all(ok))

    print("KERNEL_OK")
</pallas_src>

<mosaic_0001>
module attributes {stable_mosaic.version = 11 : i64} {
  func.func @_pe_add_kernel(%arg0: i32, %arg1: memref<8x64xf32, #tpu.memory_space<vmem>>, %arg2: memref<8x32xf32, #tpu.memory_space<vmem>>, %arg3: memref<8x64xf32, #tpu.memory_space<vmem>>) attributes {dimension_semantics = [#tpu.dimension_semantics<parallel>], iteration_bounds = array<i64: 1>, scalar_prefetch = 0 : i64, scratch_operands = 0 : i64, tpu.core_type = #tpu.core_type<tc>, window_params = [{transform_indices = @transform_0, window_bounds = array<i64: 8, 64>}, {transform_indices = @transform_1, window_bounds = array<i64: 8, 32>}, {transform_indices = @transform_2, window_bounds = array<i64: 8, 64>}]} {
    %c0 = arith.constant 0 : index
    %c0_0 = arith.constant 0 : index
    %0 = vector.load %arg1[%c0, %c0_0] : memref<8x64xf32, #tpu.memory_space<vmem>>, vector<8x64xf32>
    %c0_1 = arith.constant 0 : index
    %c0_2 = arith.constant 0 : index
    %1 = vector.load %arg2[%c0_1, %c0_2] : memref<8x32xf32, #tpu.memory_space<vmem>>, vector<8x32xf32>
    %2 = tpu.concatenate %1, %1 in 1 : vector<8x32xf32>, vector<8x32xf32> -> vector<8x64xf32>
    %3 = arith.addf %0, %2 : vector<8x64xf32>
    %c0_3 = arith.constant 0 : index
    %c0_4 = arith.constant 0 : index
    %4 = vector.load %arg3[%c0_3, %c0_4] : memref<8x64xf32, #tpu.memory_space<vmem>>, vector<8x64xf32>
    tpu.vector_store %arg3[%c0_3, %c0_4], %3 {strides = array<i32>} : memref<8x64xf32, #tpu.memory_space<vmem>>, vector<8x64xf32>,
    return
  }
  func.func @transform_0(%arg0: i32) -> (i32, i32) {
    %c0_i32 = arith.constant 0 : i32
    %c0_i32_0 = arith.constant 0 : i32
    return %arg0, %c0_i32 : i32, i32
  }
  func.func @transform_1(%arg0: i32) -> (i32, i32) {
    %c0_i32 = arith.constant 0 : i32
    %c0_i32_0 = arith.constant 0 : i32
    return %arg0, %c0_i32 : i32, i32
  }
  func.func @transform_2(%arg0: i32) -> (i32, i32) {
    %c0_i32 = arith.constant 0 : i32
    %c0_i32_0 = arith.constant 0 : i32
    return %arg0, %c0_i32 : i32, i32
  }
}

</mosaic_0001>

<bundles_post_ra>
// kernel: tpu_custom_call.1
= control target key start
LH: loop header
LB: loop body
LE: loop exit
PB: predicated region body
PF: predicated region fallthrough
CT: control target
= control target key end

     0   :  { %s93_s0 = inlined_call_operand.vmem [shape: f32[8,64], index: 0, kind: input, shape index: {}]   ;;  %s94_s1 = inlined_call_operand.vmem [shape: f32[64,32], index: 1, kind: input, shape index: {}]   ;;  %s95_s2 = inlined_call_operand.hbm [shape: f32[8,64], index: 2, kind: output, shape index: {}]  }
   0x1   :  { %v13_v0 = vld [vmem:[%s94_s1] sm:$0xff] }
   0x2   :  { %7 = vsyncpa [#allocation3], 0  ;;  %s67_s11 = smov 32   ;;  %vm18_vm0 = vcmask 261120   ;;  %v12_v1 = vld [vmem:[%s93_s0] sm:$0xff]  ;;  %s68_s14 = smov [#allocation2]  }
   0x3   :  { %15 = vrot.lane.b32.xlu0 %v13_v0, %s67_s11  ;;  %s28_s15 = sshll.u32 %s68_s14, 4  ;;  %s30_s18 = sshll.u32 %s95_s2, 4  ;;  %vm21_vm1 = vcmask 523264   ;;  %s29_s15 = int_to_ptr.vmem [resolvable:$true] %s28_s15  ;;  %s31_s18 = int_to_ptr.hbm [resolvable:$true] %s30_s18 }
  0x75   :  { %v16_v2 = vpop.permute.xlu0 %15 }
  0x76   :  { %v19_v3 = vsel %vm18_vm0, %v13_v0, %v16_v2 }
  0x77   :  { %v20_v4 = vadd.f32 %v19_v3, %v12_v1 }
  0x79   :  { %22 = vst.msk [vmem:[#allocation2] sm:$0xff] %vm21_vm1, %v20_v4 }
  0x7a   :  { %33 = dma.vmem_to_hbm [thread:$0]  %s29_s15, 128, %s31_s18, [#allocation3]  }
  0x7b   :  { %65 = dma.done.wait [#allocation3], 128  }
  0x7c   :  { %66 = vsyncadd [#allocation3], 4294967168 }
  0x7d   :  { %38 = vsyncpa [#allocation3], 1 }

</bundles_post_ra>
